<compile_context>
chip_gen: v7x
topology: tpu7x:2x2x1
jax: 0.10.0
libtpu: 0.0.40
codegen_flags: <defaults>
</compile_context>

<pallas_src>
import jax
import jax.numpy as jnp
from jax import lax
from jax.experimental import pallas as pl
from jax.experimental.pallas import tpu as pltpu


def _round_up(x: int, m: int) -> int:
    return (x + m - 1) // m * m


def _tile_and_pad(dim: int, align: int, max_tile: int):
    """Pick (tile, padded_dim) with tile % align == 0 and padded_dim % tile == 0."""
    if dim <= max_tile:
        t = _round_up(dim, align)
        return t, t
    return max_tile, _round_up(dim, max_tile)


def _vfl_kernel(x_ref, w_ref, b_ref, o_ref, acc_ref):
    # x_ref:   (tm, tk)  batch rows x input features
    # w_ref:   (tn, tk)  PyTorch nn.Linear layout (out_features, in_features)
    # b_ref:   (1,  tn)
    # o_ref:   (tm, tn)
    # acc_ref: (tm, tn)  f32 VMEM accumulator, resident across the K grid axis
    k = pl.program_id(2)

    @pl.when(k == 0)
    def _init():
        acc_ref[...] = jnp.zeros_like(acc_ref)

    # Contract x's feature dim with w's feature dim (dim 1 of both) — no
    # explicit transpose needed; the MXU handles the transposed contraction.
    acc_ref[...] += lax.dot_general(
        x_ref[...], w_ref[...],
        dimension_numbers=(((1,), (1,)), ((), ())),
        preferred_element_type=jnp.float32,
    )

    @pl.when(k == pl.num_programs(2) - 1)
    def _finalize():
        y = acc_ref[...] + b_ref[...]
        # LeakyReLU: max(y, 0.01*y) == y for y>=0, 0.01*y for y<0.
        o_ref[...] = jnp.maximum(y, 0.01 * y).astype(o_ref.dtype)


@jax.jit
def vfl_feature_extractor(x, weight, bias):
    """Forward pass of VFLFeatureExtractor.

    Args:
      x:      (B, input_dim) float32
      weight: (output_dim, input_dim) float32  (PyTorch nn.Linear convention)
      bias:   (output_dim,) float32
    Returns:
      (B, output_dim) float32
    """
    B, K = x.shape
    N, Kw = weight.shape
    assert Kw == K, (Kw, K)

    # Tile sizes: lane-dense (128-multiple) N/K tiles, 8-multiple M tiles,
    # capped at 512 so double-buffered tiles stay well inside scoped VMEM on
    # v5e/v6e/v7x.
    tm, m_pad = _tile_and_pad(B, 8, 512)
    tn, n_pad = _tile_and_pad(N, 128, 512)
    tk, k_pad = _tile_and_pad(K, 128, 512)

    # Zero-pad to tile-aligned shapes (no-op when already aligned).
    x_p = x if (m_pad == B and k_pad == K) else jnp.pad(
        x, ((0, m_pad - B), (0, k_pad - K)))
    w_p = weight if (n_pad == N and k_pad == K) else jnp.pad(
        weight, ((0, n_pad - N), (0, k_pad - K)))
    b_p = (bias if n_pad == N else jnp.pad(bias, (0, n_pad - N))).reshape(1, n_pad)

    grid = (n_pad // tn, m_pad // tm, k_pad // tk)  # (N, M, K); K last (reduction)

    cost = pl.CostEstimate(
        flops=2 * m_pad * k_pad * n_pad,
        transcendentals=0,
        bytes_accessed=4 * (m_pad * k_pad + k_pad * n_pad + m_pad * n_pad),
    )

    out = pl.pallas_call(
        _vfl_kernel,
        out_shape=jax.ShapeDtypeStruct((m_pad, n_pad), jnp.float32),
        grid_spec=pltpu.PrefetchScalarGridSpec(
            num_scalar_prefetch=0,
            grid=grid,
            in_specs=[
                # x tile depends on (batch tile i, k tile).
                pl.BlockSpec((tm, tk), lambda j, i, k: (i, k)),
                # weight tile independent of the batch axis i -> stays
                # VMEM-resident across batch tiles when K fits one tile.
                pl.BlockSpec((tn, tk), lambda j, i, k: (j, k)),
                # bias tile depends only on the N tile.
                pl.BlockSpec((1, tn), lambda j, i, k: (0, j)),
            ],
            out_specs=pl.BlockSpec((tm, tn), lambda j, i, k: (i, j)),
            scratch_shapes=[pltpu.VMEM((tm, tn), jnp.float32)],
        ),
        compiler_params=pltpu.CompilerParams(
            dimension_semantics=("parallel", "parallel", "arbitrary"),
        ),
        cost_estimate=cost,
    )(x_p, w_p, b_p)

    return out[:B, :N]


def _reference(x, weight, bias):
    y = x @ weight.T + bias
    return jnp.where(y >= 0, y, 0.01 * y)


if __name__ == "__main__":
    # Small shapes consistent with the module's forward: x is (batch, input_dim).
    batch, input_dim, output_dim = 8, 32, 16

    key = jax.random.PRNGKey(0)
    kx, kw, kb = jax.random.split(key, 3)

    x = jax.random.normal(kx, (batch, input_dim), dtype=jnp.float32)

    # Deterministic parameter init mimicking PyTorch nn.Linear's uniform init
    # U(-1/sqrt(in), 1/sqrt(in)).
    bound = 1.0 / (input_dim ** 0.5)
    weight = jax.random.uniform(kw, (output_dim, input_dim),
                                minval=-bound, maxval=bound, dtype=jnp.float32)
    bias = jax.random.uniform(kb, (output_dim,),
                              minval=-bound, maxval=bound, dtype=jnp.float32)

    out = vfl_feature_extractor(x, weight, bias)
    out = jax.block_until_ready(out)

    ref = _reference(x, weight, bias)
    assert out.shape == (batch, output_dim), out.shape
    assert jnp.allclose(out, ref, atol=1e-5, rtol=1e-5), "mismatch vs reference"

    print("KERNEL_OK")
</pallas_src>

<mosaic_0001>
module attributes {stable_mosaic.version = 11 : i64} {
  func.func @_vfl_kernel(%arg0: i32, %arg1: i32, %arg2: i32, %arg3: memref<8x128xf32, #tpu.memory_space<vmem>>, %arg4: memref<128x128xf32, #tpu.memory_space<vmem>>, %arg5: memref<1x128xf32, #tpu.memory_space<vmem>>, %arg6: memref<8x128xf32, #tpu.memory_space<vmem>>, %arg7: memref<8x128xf32, #tpu.memory_space<vmem>>) attributes {dimension_semantics = [#tpu.dimension_semantics<parallel>, #tpu.dimension_semantics<parallel>, #tpu.dimension_semantics<arbitrary>], iteration_bounds = array<i64: 1, 1, 1>, scalar_prefetch = 0 : i64, scratch_operands = 1 : i64, tpu.core_type = #tpu.core_type<tc>, window_params = [{transform_indices = @transform_0, window_bounds = array<i64: 8, 128>}, {transform_indices = @transform_1, window_bounds = array<i64: 128, 128>}, {transform_indices = @transform_2, window_bounds = array<i64: 1, 128>}, {transform_indices = @transform_3, window_bounds = array<i64: 8, 128>}]} {
    %c0_i32 = arith.constant 0 : i32
    %0 = arith.cmpi eq, %arg2, %c0_i32 : i32
    %1 = arith.extui %0 : i1 to i32
    %c0_i32_0 = arith.constant 0 : i32
    %2 = arith.cmpi ne, %1, %c0_i32_0 : i32
    scf.if %2 {
      %cst_10 = arith.constant 0.000000e+00 : f32
      %12 = vector.broadcast %cst_10 : f32 to vector<8x128xf32>
      %c0_11 = arith.constant 0 : index
      %c0_12 = arith.constant 0 : index
      %13 = vector.load %arg7[%c0_11, %c0_12] : memref<8x128xf32, #tpu.memory_space<vmem>>, vector<8x128xf32>
      tpu.vector_store %arg7[%c0_11, %c0_12], %12 {strides = array<i32>} : memref<8x128xf32, #tpu.memory_space<vmem>>, vector<8x128xf32>,
    } else {
    }
    %c0 = arith.constant 0 : index
    %c0_1 = arith.constant 0 : index
    %3 = vector.load %arg7[%c0, %c0_1] : memref<8x128xf32, #tpu.memory_space<vmem>>, vector<8x128xf32>
    %c0_2 = arith.constant 0 : index
    %c0_3 = arith.constant 0 : index
    %4 = vector.load %arg3[%c0_2, %c0_3] : memref<8x128xf32, #tpu.memory_space<vmem>>, vector<8x128xf32>
    %c0_4 = arith.constant 0 : index
    %c0_5 = arith.constant 0 : index
    %5 = vector.load %arg4[%c0_4, %c0_5] : memref<128x128xf32, #tpu.memory_space<vmem>>, vector<128x128xf32>
    %cst = arith.constant dense<0.000000e+00> : vector<8x128xf32>
    %6 = tpu.matmul %4, %5, %cst {dimension_numbers = #tpu.dot_dimension_numbers<[1], [1], [0], [0], [0, 0, 1, 0], [], []>} : vector<8x128xf32>, vector<128x128xf32>, vector<8x128xf32> -> vector<8x128xf32>
    %7 = arith.addf %3, %6 : vector<8x128xf32>
    %c0_6 = arith.constant 0 : index
    %c0_7 = arith.constant 0 : index
    %8 = vector.load %arg7[%c0_6, %c0_7] : memref<8x128xf32, #tpu.memory_space<vmem>>, vector<8x128xf32>
    tpu.vector_store %arg7[%c0_6, %c0_7], %7 {strides = array<i32>} : memref<8x128xf32, #tpu.memory_space<vmem>>, vector<8x128xf32>,
    %c0_i32_8 = arith.constant 0 : i32
    %9 = arith.cmpi eq, %arg2, %c0_i32_8 : i32
    %10 = arith.extui %9 : i1 to i32
    %c0_i32_9 = arith.constant 0 : i32
    %11 = arith.cmpi ne, %10, %c0_i32_9 : i32
    scf.if %11 {
      %c0_10 = arith.constant 0 : index
      %c0_11 = arith.constant 0 : index
      %12 = vector.load %arg7[%c0_10, %c0_11] : memref<8x128xf32, #tpu.memory_space<vmem>>, vector<8x128xf32>
      %c0_12 = arith.constant 0 : index
      %c0_13 = arith.constant 0 : index
      %13 = vector.load %arg5[%c0_12, %c0_13] : memref<1x128xf32, #tpu.memory_space<vmem>>, vector<1x128xf32>
      %14 = vector.broadcast %13 : vector<1x128xf32> to vector<8x128xf32>
      %15 = arith.addf %12, %14 : vector<8x128xf32>
      %cst_14 = arith.constant 0.00999999977 : f32
      %16 = vector.broadcast %cst_14 : f32 to vector<8x128xf32>
      %17 = arith.mulf %16, %15 : vector<8x128xf32>
      %18 = arith.maximumf %15, %17 : vector<8x128xf32>
      %c0_15 = arith.constant 0 : index
      %c0_16 = arith.constant 0 : index
      %19 = vector.load %arg6[%c0_15, %c0_16] : memref<8x128xf32, #tpu.memory_space<vmem>>, vector<8x128xf32>
      tpu.vector_store %arg6[%c0_15, %c0_16], %18 {strides = array<i32>} : memref<8x128xf32, #tpu.memory_space<vmem>>, vector<8x128xf32>,
    } else {
    }
    return
  }
  func.func @transform_0(%arg0: i32, %arg1: i32, %arg2: i32) -> (i32, i32) {
    %c0_i32 = arith.constant 0 : i32
    return %arg1, %arg2 : i32, i32
  }
  func.func @transform_1(%arg0: i32, %arg1: i32, %arg2: i32) -> (i32, i32) {
    %c0_i32 = arith.constant 0 : i32
    return %arg0, %arg2 : i32, i32
  }
  func.func @transform_2(%arg0: i32, %arg1: i32, %arg2: i32) -> (i32, i32) {
    %c0_i32 = arith.constant 0 : i32
    %c0_i32_0 = arith.constant 0 : i32
    return %c0_i32, %arg0 : i32, i32
  }
  func.func @transform_3(%arg0: i32, %arg1: i32, %arg2: i32) -> (i32, i32) {
    %c0_i32 = arith.constant 0 : i32
    return %arg1, %arg0 : i32, i32
  }
}

</mosaic_0001>

<bundles_post_ra>
// kernel: vfl_feature_extractor.1
= control target key start
LH: loop header
LB: loop body
LE: loop exit
PB: predicated region body
PF: predicated region fallthrough
CT: control target
= control target key end

     0   :  { %v244_v2 = vmov 0.0|0.0   ;;  %vm245_vm0 = vmmov 0   ;;  %v246_v4 = vmov 0.0   ;;  %s334_s0 = inlined_call_operand.vmem [shape: f32[8,128], index: 0, kind: input, shape index: {}]   ;;  %s335_s1 = inlined_call_operand.vmem [shape: f32[128,128], index: 1, kind: input, shape index: {}]   ;;  %s336_s2 = inlined_call_operand.vmem [shape: f32[1,128], index: 2, kind: input, shape index: {}]   ;;  %s337_s3 = inlined_call_operand.hbm [shape: f32[8,128], index: 3, kind: output, shape index: {}]  }
   0x1   :  { %v22_v0 = vld [vmem:[%s335_s1] sm:$0xff]  ;;  %v23_v1 = vld [vmem:[%s335_s1 + $0x8] sm:$0xff]  ;;  %192 = vmatprep.subr.bf16.mxu0 %v244_v2  ;;  %189 = vmatprep.mubr.msk.f32.mxu0 %vm245_vm0, %v246_v4  ;;  %v24_v5 = vld [vmem:[%s335_s1 + $0x10] sm:$0xff] }
   0x2   :  { %v193_v3 = vpack.c.bf16 %v23_v1, %v22_v0  ;;  %v25_v6 = vld [vmem:[%s335_s1 + $0x18] sm:$0xff] }
   0x4   :  { %194 = vmatpush3.bf16.xpose.msra.mxu0 %v193_v3 }
   0x5   :  { %195 = vmatprep.subr.bf16.mxu0 %v244_v2 }
   0x6   :  { %8 = vsyncpa [#allocation4], 0  ;;  %v196_v7 = vpack.c.bf16 %v25_v6, %v24_v5  ;;  %v26_v8 = vld [vmem:[%s335_s1 + $0x20] sm:$0xff]  ;;  %v27_v9 = vld [vmem:[%s335_s1 + $0x28] sm:$0xff]  ;;  %s247_s21 = smov [#allocation3]  }
   0x7   :  { %v199_v10 = vpack.c.bf16 %v27_v9, %v26_v8  ;;  %v28_v11 = vld [vmem:[%s335_s1 + $0x30] sm:$0xff]  ;;  %v29_v12 = vld [vmem:[%s335_s1 + $0x38] sm:$0xff]  ;;  %v30_v14 = vld [vmem:[%s335_s1 + $0x40] sm:$0xff]  ;;  %s131_s22 = sshll.u32 %s247_s21, 4  ;;  %s132_s22 = int_to_ptr.vmem [resolvable:$true] %s131_s22 }
   0x8   :  { %v202_v13 = vpack.c.bf16 %v29_v12, %v28_v11  ;;  %v31_v15 = vld [vmem:[%s335_s1 + $0x48] sm:$0xff]  ;;  %v32_v17 = vld [vmem:[%s335_s1 + $0x50] sm:$0xff]  ;;  %v33_v18 = vld [vmem:[%s335_s1 + $0x58] sm:$0xff]  ;;  %p225_p1 = scmp.lt.s32.totalorder %s132_s22, %s132_s22 }
   0x9   :  { %v205_v16 = vpack.c.bf16 %v31_v15, %v30_v14  ;;  %v208_v19 = vpack.c.bf16 %v33_v18, %v32_v17  ;;  %v34_v20 = vld [vmem:[%s335_s1 + $0x60] sm:$0xff]  ;;  %v35_v21 = vld [vmem:[%s335_s1 + $0x68] sm:$0xff]  ;;  %v36_v23 = vld [vmem:[%s335_s1 + $0x70] sm:$0xff] }
   0xa   :  { %v211_v22 = vpack.c.bf16 %v35_v21, %v34_v20  ;;  %v37_v24 = vld [vmem:[%s335_s1 + $0x78] sm:$0xff]  ;;  %v21_v26 = vld [vmem:[%s334_s0] sm:$0xff]  ;;  %s220_s1 = scalar_lea.vmem %s132_s22, 128 }
   0xb   :  { %v214_v25 = vpack.c.bf16 %v37_v24, %v36_v23  ;;  %v139_v27 = vld [vmem:[%s336_s2] ss:$0 sm:$0xff]  ;;  %p221_p0 = scmp.ne.s32.totalorder %s132_s22, %s220_s1  ;;  %p226_p2 = scmp.lt.s32.totalorder %s220_s1, %s220_s1 }
   0xc   :  { %197 = vmatpush3.bf16.xpose.msra.mxu0 %v196_v7 }
   0xd   :  { %198 = vmatprep.subr.bf16.mxu0 %v244_v2  ;;  %p227_p3 = por %p226_p2, %p225_p1 }
   0xf   :  { %p228_p4 = pnand %p227_p3, %p221_p0 }
  0x14   :  { %200 = vmatpush3.bf16.xpose.msra.mxu0 %v199_v10 }
  0x15   :  { %201 = vmatprep.subr.bf16.mxu0 %v244_v2 }
  0x1c   :  { %203 = vmatpush3.bf16.xpose.msra.mxu0 %v202_v13 }
  0x1d   :  { %204 = vmatprep.subr.bf16.mxu0 %v244_v2 }
  0x24   :  { %206 = vmatpush3.bf16.xpose.msra.mxu0 %v205_v16 }
  0x25   :  { %207 = vmatprep.subr.bf16.mxu0 %v244_v2 }
  0x2c   :  { %209 = vmatpush3.bf16.xpose.msra.mxu0 %v208_v19 }
  0x2d   :  { %210 = vmatprep.subr.bf16.mxu0 %v244_v2 }
  0x34   :  { %212 = vmatpush3.bf16.xpose.msra.mxu0 %v211_v22 }
  0x35   :  { %213 = vmatprep.subr.bf16.mxu0 %v244_v2 }
  0x3c   :  { %215 = vmatpush3.bf16.xpose.msra.mxu0 %v214_v25 }
  0x43   :  { %190 = vmatmul.mubr.f32.vlgmr.msra.gmra.mrb[0].mxu0 %v21_v26 }
 0x116   :  { %v104_v28 = vpop.f32.mrb[0].mxu0 }
 0x117   :  { %v121_v29 = vadd.f32 %v139_v27, %v104_v28  ;;  %v191_v30 = vpop.f32.mrb[1].mxu0 }
 0x119   :  { %v122_v31 = vmul.f32 0.01, %v121_v29 }
 0x11b   :  { %v123_v32 = vmax.f32 %v121_v29, %v122_v31 }
 0x11d   :  { %124 = vst [vmem:[#allocation3] sm:$0xff] %v123_v32 }
 0x11e   :  { %231 = shalt.err (!%p228_p4)
}
 0x11f   :  { %s232_s2 = scalar_lea.hbm %s337_s3, 128 }
 0x120   :  { %p233_p5 = scmp.ne.s32.totalorder %s337_s3, %s232_s2  ;;  %p236_p6 = scmp.lt.u32.totalorder %s232_s2, %s337_s3 }
 0x122   :  { %p238_p7 = pnand %p236_p6, %p233_p5 }
 0x124   :  { %241 = shalt.err (!%p238_p7)
}
 0x125   :  { %134 = dma.vmem_to_hbm [thread:$0]  %s132_s22, 128, %s337_s3, [#allocation4]  }
 0x126   :  { %242 = dma.done.wait [#allocation4], 128  }
 0x127   :  { %243 = vsyncadd [#allocation4], 4294967168 }
 0x128   :  { %138 = vsyncpa [#allocation4], 1 }

</bundles_post_ra>
